<compile_context>
chip_gen: v5e
topology: v5e:2x2
jax: 0.10.0
libtpu: 0.0.40
codegen_flags: <defaults>
</compile_context>

<pallas_src>
import jax
import jax.numpy as jnp
from jax.experimental import pallas as pl
from jax.experimental.pallas import tpu as pltpu


def _temporal_projection_kernel(x_ref, w_ref, b_ref, o_ref):
    # x_ref: (TB, L, TC) input block
    # w_ref: (H, L)      resident weight
    # b_ref: (H, 1)      resident bias
    # o_ref: (TB, H, TC) output block
    w = w_ref[...]                                              # (H, L)
    # Hoist the bias broadcast out of the batch loop.
    bias = jnp.broadcast_to(b_ref[...], (w_ref.shape[0], x_ref.shape[2]))

    tb = x_ref.shape[0]

    def body(i, carry):
        x_i = x_ref[i]                                          # (L, TC)
        y = jnp.dot(w, x_i, preferred_element_type=jnp.float32)  # (H, TC) on MXU
        o_ref[i] = (y + bias).astype(o_ref.dtype)
        return carry

    jax.lax.fori_loop(0, tb, body, 0)


def _choose_tiles(B, L, C, H, in_itemsize, out_itemsize):
    """Pick (TB, TC): batch-tile and channel-tile sizes."""
    # Channel tile: lane-dense multiple of 128 when C is large, else full C
    # (block last dim must be a multiple of 128 or equal to the full dim).
    TC = 512 if C > 512 else C

    # Batch tile: target ~16 MiB total for the double-buffered in+out tiles.
    budget = 16 * 1024 * 1024
    per_batch = 2 * TC * (L * in_itemsize + H * out_itemsize)
    TB = max(1, min(B, budget // max(per_batch, 1)))

    # Keep at least 2 grid steps when possible (v7x has 2 TensorCores).
    if B >= 2 and pl.cdiv(B, TB) * pl.cdiv(C, TC) < 2:
        TB = pl.cdiv(B, 2)
    return int(TB), int(TC)


def temporal_projection(x, weight, bias, *, compute_dtype=None):
    """
    x:      (B, L, C)
    weight: (H, L)   (same layout as nn.Linear.weight)
    bias:   (H,)     (same as nn.Linear.bias)
    compute_dtype: optional dtype (e.g. jnp.bfloat16) for x/weight — halves HBM
                   traffic on v6e/v7x; accumulation and bias stay float32.
    returns (B, H, C) in x's original dtype.
    """
    B, L, C = x.shape
    H = weight.shape[0]
    out_dtype = x.dtype

    if compute_dtype is not None:
        x = x.astype(compute_dtype)
        weight = weight.astype(compute_dtype)
    bias2d = bias.astype(jnp.float32).reshape(H, 1)

    TB, TC = _choose_tiles(B, L, C, H,
                           jnp.dtype(x.dtype).itemsize,
                           jnp.dtype(out_dtype).itemsize)
    grid = (pl.cdiv(B, TB), pl.cdiv(C, TC))

    return pl.pallas_call(
        _temporal_projection_kernel,
        out_shape=jax.ShapeDtypeStruct((B, H, C), out_dtype),
        grid_spec=pltpu.PrefetchScalarGridSpec(
            num_scalar_prefetch=0,
            grid=grid,
            in_specs=[
                pl.BlockSpec((TB, L, TC), lambda i, j: (i, 0, j)),  # x tile
                pl.BlockSpec((H, L), lambda i, j: (0, 0)),          # W resident
                pl.BlockSpec((H, 1), lambda i, j: (0, 0)),          # bias resident
            ],
            out_specs=pl.BlockSpec((TB, H, TC), lambda i, j: (i, 0, j)),
        ),
        compiler_params=pltpu.CompilerParams(
            dimension_semantics=("parallel", "parallel"),
            vmem_limit_bytes=32 * 1024 * 1024,
        ),
    )(x, weight, bias2d)


if __name__ == "__main__":
    # Small shapes consistent with the module:
    B = 2            # batch
    L = 16           # input_size (lookback length)
    C = 32           # number of channels / series
    H = 8            # forecast_horizon

    key = jax.random.PRNGKey(0)
    kx, kw, kb = jax.random.split(key, 3)

    x = jax.random.normal(kx, (B, L, C), dtype=jnp.float32)

    # Deterministic nn.Linear-style init: U(-1/sqrt(L), 1/sqrt(L))
    bound = 1.0 / (L ** 0.5)
    weight = jax.random.uniform(kw, (H, L), minval=-bound, maxval=bound,
                                dtype=jnp.float32)
    bias = jax.random.uniform(kb, (H,), minval=-bound, maxval=bound,
                              dtype=jnp.float32)

    # Pure-JAX reference of the PyTorch forward: permute -> linear -> permute
    ref = jnp.einsum("hl,blc->bhc", weight, x) + bias[None, :, None]

    # f32 path (bit-for-bit semantics of the module)
    out = temporal_projection(x, weight, bias)
    out = jax.block_until_ready(out)
    assert out.shape == (B, H, C), out.shape
    assert jnp.allclose(out, ref, atol=1e-5, rtol=1e-5), "f32 mismatch vs reference"

    # bf16-input path (v6e/v7x HBM-traffic optimization) — loose smoke check only.
    out_bf16 = temporal_projection(x, weight, bias, compute_dtype=jnp.bfloat16)
    out_bf16 = jax.block_until_ready(out_bf16)
    assert out_bf16.shape == (B, H, C), out_bf16.shape
    assert jnp.allclose(out_bf16, ref, atol=1e-1, rtol=1e-1), "bf16 mismatch vs reference"

    print("KERNEL_OK")
</pallas_src>

<mosaic_0001>
module attributes {stable_mosaic.version = 11 : i64} {
  func.func @_temporal_projection_kernel(%arg0: i32, %arg1: i32, %arg2: memref<1x16x32xf32, #tpu.memory_space<vmem>>, %arg3: memref<8x16xf32, #tpu.memory_space<vmem>>, %arg4: memref<8x1xf32, #tpu.memory_space<vmem>>, %arg5: memref<1x8x32xf32, #tpu.memory_space<vmem>>) attributes {dimension_semantics = [#tpu.dimension_semantics<parallel>, #tpu.dimension_semantics<parallel>], iteration_bounds = array<i64: 2, 1>, scalar_prefetch = 0 : i64, scratch_operands = 0 : i64, tpu.core_type = #tpu.core_type<tc>, window_params = [{transform_indices = @transform_0, window_bounds = array<i64: 1, 16, 32>}, {pipeline_mode = #tpu.pipeline_mode<synchronous>, transform_indices = @transform_1, window_bounds = array<i64: 8, 16>}, {pipeline_mode = #tpu.pipeline_mode<synchronous>, transform_indices = @transform_2, window_bounds = array<i64: 8, 1>}, {transform_indices = @transform_3, window_bounds = array<i64: 1, 8, 32>}]} {
    %c0 = arith.constant 0 : index
    %c0_0 = arith.constant 0 : index
    %0 = vector.load %arg3[%c0, %c0_0] : memref<8x16xf32, #tpu.memory_space<vmem>>, vector<8x16xf32>
    %c0_1 = arith.constant 0 : index
    %c0_2 = arith.constant 0 : index
    %1 = vector.load %arg4[%c0_1, %c0_2] : memref<8x1xf32, #tpu.memory_space<vmem>>, vector<8x1xf32>
    %2 = vector.shape_cast %1 : vector<8x1xf32> to vector<8x1xf32>
    %3 = vector.broadcast %2 : vector<8x1xf32> to vector<8x32xf32>
    %c0_i32 = arith.constant 0 : i32
    %4 = arith.index_cast %c0_i32 : i32 to index
    %c0_3 = arith.constant 0 : index
    %c0_4 = arith.constant 0 : index
    %5 = vector.load %arg2[%4, %c0_3, %c0_4] : memref<1x16x32xf32, #tpu.memory_space<vmem>>, vector<1x16x32xf32>
    %6 = vector.shape_cast %5 : vector<1x16x32xf32> to vector<16x32xf32>
    %cst = arith.constant dense<0.000000e+00> : vector<8x32xf32>
    %7 = tpu.matmul %0, %6, %cst {dimension_numbers = #tpu.dot_dimension_numbers<[1], [0], [0], [1], [0, 0, 1, 1], [], []>} : vector<8x16xf32>, vector<16x32xf32>, vector<8x32xf32> -> vector<8x32xf32>
    %8 = arith.addf %7, %3 : vector<8x32xf32>
    %9 = arith.index_cast %c0_i32 : i32 to index
    %c0_5 = arith.constant 0 : index
    %c0_6 = arith.constant 0 : index
    %10 = vector.load %arg5[%9, %c0_5, %c0_6] : memref<1x8x32xf32, #tpu.memory_space<vmem>>, vector<1x8x32xf32>
    %11 = vector.shape_cast %10 : vector<1x8x32xf32> to vector<8x32xf32>
    %12 = vector.shape_cast %8 : vector<8x32xf32> to vector<1x8x32xf32>
    tpu.vector_store %arg5[%9, %c0_5, %c0_6], %12 {strides = array<i32>} : memref<1x8x32xf32, #tpu.memory_space<vmem>>, vector<1x8x32xf32>,
    %c1_i32 = arith.constant 1 : i32
    return
  }
  func.func @transform_0(%arg0: i32, %arg1: i32) -> (i32, i32, i32) {
    %c0_i32 = arith.constant 0 : i32
    %c0_i32_0 = arith.constant 0 : i32
    return %arg0, %c0_i32, %arg1 : i32, i32, i32
  }
  func.func @transform_1(%arg0: i32, %arg1: i32) -> (i32, i32) {
    %c0_i32 = arith.constant 0 : i32
    %c0_i32_0 = arith.constant 0 : i32
    %c0_i32_1 = arith.constant 0 : i32
    return %c0_i32, %c0_i32_0 : i32, i32
  }
  func.func @transform_2(%arg0: i32, %arg1: i32) -> (i32, i32) {
    %c0_i32 = arith.constant 0 : i32
    %c0_i32_0 = arith.constant 0 : i32
    %c0_i32_1 = arith.constant 0 : i32
    return %c0_i32, %c0_i32_0 : i32, i32
  }
  func.func @transform_3(%arg0: i32, %arg1: i32) -> (i32, i32, i32) {
    %c0_i32 = arith.constant 0 : i32
    %c0_i32_0 = arith.constant 0 : i32
    return %arg0, %c0_i32, %arg1 : i32, i32, i32
  }
}

</mosaic_0001>

<bundles_post_ra>
// kernel: tpu_custom_call.1
= control target key start
LH: loop header
LB: loop body
LE: loop exit
PB: predicated region body
PF: predicated region fallthrough
CT: control target
= control target key end

     0   :  { %8 = vsyncpa [#allocation3], 0  ;;  %s687_s0 = inlined_call_operand.hbm [shape: f32[2,16,32], index: 0, kind: input, shape index: {}]   ;;  %s688_s1 = inlined_call_operand.vmem [shape: f32[8,16], index: 1, kind: input, shape index: {}]   ;;  %s689_s2 = inlined_call_operand.vmem [shape: f32[8,1], index: 2, kind: input, shape index: {}]   ;;  %s690_s3 = inlined_call_operand.hbm [shape: f32[2,8,32], index: 3, kind: output, shape index: {}]  }
   0x1   :  { %10 = vsyncpa [#allocation3 + $0x1], 0 }
   0x2   :  { %11 = vsyncpa [#allocation4], 0 }
   0x3   :  { %13 = vsyncpa [#allocation4 + $0x1], 0  ;;  %s560_s12 = smov 0   ;;  %s562_s13 = smov 0  }
   0x4   :  { %s564_s14 = smov 0   ;;  %s566_s15 = smov 0  }
   0x5   :  { %s568_s16 = smov 0   ;;  %s570_s17 = smov 0  }
   0x6 LB: > { %s341_s18 = sadd.s32 4294967295, %s535_s17   ;;  %s342_s19 = sadd.s32 4294967294, %s535_s17   ;;  %s535_s17 = sphi %s570_s17, %s19_s17   ;;  %s531_s16 = sphi %s568_s16, %s699_s16   ;;  %s527_s15 = sphi %s566_s15, %s698_s15   ;;  %s523_s14 = sphi %s564_s14, %s697_s14   ;;  %s519_s13 = sphi %s562_s13, %s696_s13   ;;  %s515_s12 = sphi %s560_s12, %s695_s12  }
   0x7   : > { %s31_s20 = sadd.s32 1, %s531_s16  ;;  %s40_s21 = sadd.s32 1, %s523_s14 }
   0x8   : > { %p33_p0 = scmp.ge.s32.totalorder %s31_s20, 2  ;;  %p47_p1 = scmp.ne.s32.totalorder %s523_s14, %s519_s13 }
   0x9   : > { %p48_p2 = scmp.eq.s32.totalorder %s535_s17, 0  ;;  %p53_p3 = scmp.ne.s32.totalorder %s519_s13, %s515_s12 }
   0xa   : > { %s701_s20 = smov (%p33_p0, %s31_s20), 0  ;;  %p54_p5 = scmp.eq.s32.totalorder %s341_s18, 0 }
   0xb   : > { %p601_p4 = por %p48_p2, %p47_p1  ;;  %s35_s23 = ssub.s32 %s531_s16, %s701_s20 }
   0xc   : > { %p121_p6 = scmp.eq.s32.totalorder %s341_s18, 1  ;;  %p38_p7 = scmp.eq.s32.totalorder %s35_s23, 0 }
   0xd   : > { %p607_p8 = por %p54_p5, %p53_p3  ;;  %p127_p10 = scmp.eq.s32.totalorder %s342_s19, 1 }
   0xe   : > { %p611_p9 = por %p121_p6, %p47_p1  ;;  %p344_p12 = scmp.ge.s32.totalorder %s535_s17, 2 }
   0xf   : > { %s616_s26 = scalar_select %p38_p7, %s523_s14, %s40_s21  }
  0x10   : > { %p618_p11 = por %p127_p10, %p53_p3  ;;  %p369_p13 = scmp.lt.s32.totalorder %s535_s17, 2 }
  0x11   : > { %s153_s28 = sand.u32 1, %s523_s14   ;;  %s356_s30 = sshll.u32 %s531_s16, 4 }
  0x12   : > { %s345_s29 = sshll.u32 %s153_s28, 4  ;;  %s163_s6 = scalar_lea.hbm %s687_s0, %s356_s30 }
  0x13   : > { %s157_s7 = scalar_lea.vmem [#allocation2], %s345_s29  ;;  %s164_s9 = sshll.u32 %s163_s6, 4  ;;  %s165_s9 = int_to_ptr.hbm [resolvable:$true] %s164_s9 }
  0x14   : > { %s166_s8 = sshll.u32 %s157_s7, 4  ;;  %p362_p0 = pnand %p369_p13, %p601_p4  ;;  %s167_s8 = int_to_ptr.vmem [resolvable:$true] %s166_s8 }
  0x15   : > { %p348_p1 = scmp.ge.s32.totalorder %s535_s17, 1  ;;  %s154_s10 = scalar_lea.sflag [#allocation3], %s153_s28 }
  0x16   : > { %s537_s11 = smov 128   ;;  %s538_s18 = smov 8  }
  0x17   : > { %364 = dma.hbm_to_vmem [thread:$0]  (!%p362_p0), %s165_s9, 256, %s167_s8, %s154_s10, %s537_s11, %s537_s11, %s538_s18  }
  0x18   : > { %p174_p2 = scmp.lt.s32.totalorder %s535_s17, 3 }
  0x1a   : > { %p175_p3 = pnand %p348_p1, %p174_p2 }
  0x1b   : > { %s634_s19 = sand.u32 (!%p175_p3), 1, %s519_s13  }
  0x1c   : > { %178 = sbr.rel (%p175_p3) target bundleno = 169 (0xa9), region = 32  ;;  %s349_s21 = sshll.u32 (!%p175_p3), %s634_s19, 4 }
  0x1d   : > { %s181_s23 = scalar_lea.sflag (!%p175_p3), [#allocation3], %s634_s19  ;;  %s184_s29 = scalar_lea.vmem (!%p175_p3), [#allocation2], %s349_s21 }
  0x21   : > { %506 = dma.done.wait (%p607_p8), %s181_s23, 256  }
  0x22   : > { %508 = vsyncadd (%p607_p8), %s181_s23, 4294967040  ;;  %v539_v0 = vmov 0   ;;  %v216_v1 = vld [vmem:[%s184_s29 + $0x8] sm:$0xff]  ;;  %v215_v2 = vld [vmem:[%s184_s29] sm:$0xff]  ;;  %vm217_vm0 = vcmask 130048   ;;  %s350_s24 = sshll.u32 %s634_s19, 3 }
  0x23   : > { %422 = vset.pattern.permute.xlu0 %v539_v0  ;;  %235 = vmatpush.msra.mxu0 %v216_v1  ;;  %v208_v3 = vld [vmem:[%s688_s1] sm:$0xff]  ;;  %s353_s5 = sshll.u32 %s527_s15, 3  ;;  %s207_s9 = scalar_lea.vmem [#allocation5], %s350_s24  ;;  %vm241_vm1 = vcmask 261120  }
  0x24   : > { %v209_v4 = vld [vmem:[%s689_s2] sm:$0xff]  ;;  %s255_s8 = scalar_lea.hbm %s690_s3, %s353_s5  ;;  %s257_s10 = sshll.u32 %s207_s9, 4  ;;  %s258_s10 = int_to_ptr.vmem [resolvable:$true] %s257_s10 }
  0x25   : > { %212 = vperm.xlu0 %422, %v209_v4   ;;  %236 = vmatpush.msra.mxu0 %v215_v2  ;;  %s259_s11 = sshll.u32 %s255_s8, 4  ;;  %s244_s18 = scalar_lea.sflag [#allocation4], %s634_s19  ;;  %s260_s11 = int_to_ptr.hbm [resolvable:$true] %s259_s11 }
  0x26   : > { %351 = vmatmul.msk.f32.vlgmr.msra.gmra.mxu0 %vm217_vm0, %v208_v3  ;;  %s467_s21 = sshra.s32 %s260_s11, 4  ;;  %s473_s22 = scalar_lea.hbm %s690_s3, 16  ;;  %s468_s21 = int_to_ptr.hbm [resolvable:$true] %s467_s21 }
  0x27   : > { %s469_s23 = scalar_lea.hbm %s468_s21, 8  ;;  %p474_p7 = scmp.lt.s32.totalorder %s468_s21, %s690_s3 }
  0x28   : > { %p470_p4 = scmp.ne.s32.totalorder %s468_s21, %s469_s23  ;;  %p475_p8 = scmp.lt.s32.totalorder %s473_s22, %s469_s23 }
  0x2a   : > { %p471_p5 = pnand %p470_p4, %p611_p9  ;;  %p476_p10 = por %p475_p8, %p474_p7 }
  0x2c   : > { %p472_p6 = pneg %p471_p5 }
  0x2e   : > { %p477_p13 = pnand %p476_p10, %p472_p6 }
  0x97   : > { %v213_v5 = vpop.permute.xlu0 %212 }
  0xa3   : > { %v238_v6 = vpop.f32.mrf.mxu0 }
  0xa4   : > { %v239_v7 = vadd.f32 %v238_v6, %v213_v5 }
  0xa6   : > { %242 = vst.msk [vmem:[%s207_s9] sm:$0xff] %vm241_vm1, %v239_v7 }
  0xa7   : > { %480 = shalt.err (!%p477_p13)
}
  0xa8   : > { %359 = dma.vmem_to_hbm [thread:$0]  (%p611_p9), %s258_s10, 128, %s260_s11, %s244_s18  }
  0xa9 PF: > { %s271_s19 = sand.u32 1, %s515_s12   ;;  %p366_p0 = pnand %p344_p12, %p618_p11 }
  0xaa   : > { %s272_s4 = scalar_lea.sflag [#allocation4], %s271_s19 }
  0xab   : > { %p367_p1 = pneg %p366_p0 }
  0xad   : > { %510 = dma.done.wait (%p367_p1), %s272_s4, 128  }
  0xae   : > { %512 = vsyncadd (%p367_p1), %s272_s4, 4294967168  ;;  %s19_s17 = sadd.s32 1, %s535_s17   ;;  %s695_s12 = smov %s519_s13 }
  0xaf   : > { %p16_p2 = scmp.ge.s32.totalorder %s19_s17, 4   ;;  %s696_s13 = smov %s523_s14 }
  0xb0   : > { %s697_s14 = smov %s616_s26  ;;  %s698_s15 = smov %s531_s16 }
  0xb1   : > { %s699_s16 = smov %s701_s20  ;;  %18 = sbr.rel (!%p16_p2) target bundleno = 6 (0x6), region = 77 }
  0xb6   :  { %278 = vsyncpa [#allocation3], 1 }
  0xb7   :  { %280 = vsyncpa [#allocation3 + $0x1], 1 }
  0xb8   :  { %281 = vsyncpa [#allocation4], 1 }
  0xb9   :  { %283 = vsyncpa [#allocation4 + $0x1], 1 }

</bundles_post_ra>
